<compile_context>
chip_gen: v7x
topology: tpu7x:2x2x1
jax: 0.10.0
libtpu: 0.0.40
codegen_flags: <defaults>
</compile_context>

<pallas_src>
import jax
import jax.numpy as jnp
from jax.experimental import pallas as pl
from jax.experimental.pallas import tpu as pltpu


def _bias_kernel(beta_ref, x_ref, o_ref):
    # beta_ref: (1, 1) scalar in SMEM; x_ref / o_ref: lane-dense VMEM tiles.
    # One VPU broadcast-add per vreg — fully hidden under the HBM DMA stream.
    o_ref[...] = (x_ref[...] + beta_ref[0, 0]).astype(o_ref.dtype)


def _round_up(x, m):
    return -(-x // m) * m


def _target_block_bytes():
    """Per-generation row-tile target (amortize ~0.35us/step vs HBM BW)."""
    try:
        kind = jax.devices()[0].device_kind.lower()
    except Exception:
        kind = ""
    if "v5" in kind:
        return 3 << 20   # v5e: 16 MiB scoped-VMEM default; 4 tiles = 12 MiB
    if "v6" in kind:
        return 4 << 20   # v6e: ~1.4 TB/s -> step overhead ~6%
    return 6 << 20       # v7x / newer: ~3.2 TB/s -> step overhead ~9%, 24 MiB buffers


def bias_layer_forward(x, alpha, beta, *, donate_x=False):
    """Forward of BiasLayer: returns x + beta (alpha is unused, as in PyTorch)."""
    del alpha  # parameter exists on the module but forward() never uses it
    orig_shape = x.shape
    total = int(x.size)
    if total == 0:
        return x

    beta_arr = jnp.asarray(beta).reshape(())
    # Match PyTorch type promotion (e.g. bf16 x + fp32 beta parameter -> fp32).
    out_dtype = jnp.result_type(x.dtype, beta_arr.dtype)
    in_itemsize = jnp.dtype(x.dtype).itemsize
    out_itemsize = jnp.dtype(out_dtype).itemsize
    itemsize = max(in_itemsize, out_itemsize)
    # Sublane multiple of the narrowest VMEM dtype (8 f32 / 16 bf16 / 32 i8).
    sub = max(8, 32 // min(in_itemsize, out_itemsize))

    # Lane-dense width: largest multiple of 128 (<= 2048) dividing the element
    # count, so the flatten/reshape is a free view (no pad / slice passes).
    C = 0
    for cand in (2048, 1024, 512, 256, 128):
        if total % cand == 0:
            C = cand
            break

    flat = x.reshape(-1)
    if C:
        rows = total // C
        padded_total = total
    else:
        # Fallback only for element counts not a multiple of 128.
        # TODO(synk): a manual pl.ANY tail DMA could remove this extra pass.
        C = 128
        rows = -(-total // C)
        padded_total = rows * C
        flat = jnp.pad(flat, (0, padded_total - total))
    x2d = flat.reshape(rows, C)

    # Row tile: ~target_block_bytes per buffer, multiple of the sublane count.
    if rows <= sub:
        tr = rows                       # tiny input: one full-array block
    else:
        tr = max(sub, (_target_block_bytes() // (C * itemsize)) // sub * sub)
        if -(-rows // tr) < 4:
            # Keep >= ~4 grid steps so each v7x TensorCore pipelines >= 2 steps.
            tr = max(sub, _round_up(-(-rows // 4), sub))
    grid = -(-rows // tr)               # partial last block is masked by Pallas

    # Scalar beta in SMEM (32-bit scalar path).
    if out_itemsize >= 4:
        beta_smem_dtype = out_dtype
    elif jnp.issubdtype(out_dtype, jnp.floating):
        beta_smem_dtype = jnp.float32
    else:
        beta_smem_dtype = jnp.int32
    beta_smem = beta_arr.astype(beta_smem_dtype).reshape(1, 1)

    extra = {}
    if donate_x and padded_total == total and x.dtype == out_dtype:
        # In-place add when the caller donates x: no extra HBM output buffer
        # and no copy-insertion (provided x is not used afterwards).
        extra["input_output_aliases"] = {1: 0}

    out2d = pl.pallas_call(
        _bias_kernel,
        out_shape=jax.ShapeDtypeStruct((rows, C), out_dtype),
        grid_spec=pl.GridSpec(
            grid=(grid,),
            in_specs=[
                pl.BlockSpec(memory_space=pltpu.SMEM),      # beta scalar
                pl.BlockSpec((tr, C), lambda i: (i, 0)),    # x tile (lane-dense)
            ],
            out_specs=pl.BlockSpec((tr, C), lambda i: (i, 0)),
        ),
        compiler_params=pltpu.CompilerParams(
            dimension_semantics=("parallel",),
            # Per-generation tiles keep 2x(in+out) buffers under the scoped
            # VMEM defaults (12 MiB v5e, 16 MiB v6e, 24 MiB v7x).
        ),
        cost_estimate=pl.CostEstimate(
            flops=total,
            transcendentals=0,
            bytes_accessed=total * in_itemsize + total * out_itemsize,
        ),
        **extra,
    )(beta_smem, x2d)

    out_flat = out2d.reshape(-1)
    if padded_total != total:
        out_flat = out_flat[:total]
    return out_flat.reshape(orig_shape)


if __name__ == "__main__":
    key = jax.random.PRNGKey(0)

    # BiasLayer parameters, matching torch init: alpha = ones(1), beta = zeros(1).
    alpha = jnp.ones((1,), dtype=jnp.float32)   # unused in forward (kept for parity)
    beta = jnp.zeros((1,), dtype=jnp.float32)

    # Small logits-style tensor; 2048 elements -> zero-copy lane-dense path.
    x = jax.random.normal(key, (2, 4, 16, 16), dtype=jnp.float32)
    out = jax.block_until_ready(bias_layer_forward(x, alpha, beta))
    assert out.shape == x.shape
    assert jnp.allclose(out, x + beta, atol=1e-6), "mismatch vs reference"

    # Non-128-multiple element count + nonzero beta -> padded fallback path.
    x2 = jax.random.normal(jax.random.PRNGKey(0), (3, 5, 7, 9), dtype=jnp.float32)
    beta2 = jnp.full((1,), 0.5, dtype=jnp.float32)
    out2 = jax.block_until_ready(bias_layer_forward(x2, alpha, beta2))
    assert out2.shape == x2.shape
    assert jnp.allclose(out2, x2 + beta2, atol=1e-6), "mismatch vs reference (padded)"

    # Larger 128-multiple tensor -> multi-step grid (+ in-place aliasing path).
    x3 = jax.random.normal(jax.random.PRNGKey(0), (2, 8, 128, 256), dtype=jnp.float32)
    beta3 = jnp.full((1,), 0.25, dtype=jnp.float32)
    ref3 = x3 + beta3
    out3 = jax.block_until_ready(bias_layer_forward(x3, alpha, beta3, donate_x=True))
    assert out3.shape == x3.shape
    assert jnp.allclose(out3, ref3, atol=1e-6), "mismatch vs reference (multi-step)"

    print("KERNEL_OK")
</pallas_src>

<mosaic_0001>
module attributes {stable_mosaic.version = 11 : i64} {
  func.func @_bias_kernel(%arg0: i32, %arg1: memref<1x1xf32, #tpu.memory_space<smem>>, %arg2: memref<1x2048xf32, #tpu.memory_space<vmem>>, %arg3: memref<1x2048xf32, #tpu.memory_space<vmem>>) attributes {dimension_semantics = [#tpu.dimension_semantics<parallel>], iteration_bounds = array<i64: 1>, scalar_prefetch = 0 : i64, scratch_operands = 0 : i64, tpu.core_type = #tpu.core_type<tc>, window_params = [{transform_indices = @transform_0, window_bounds = array<i64: 1, 1>}, {transform_indices = @transform_1, window_bounds = array<i64: 1, 2048>}, {transform_indices = @transform_2, window_bounds = array<i64: 1, 2048>}]} {
    %c0 = arith.constant 0 : index
    %c0_0 = arith.constant 0 : index
    %0 = vector.load %arg2[%c0, %c0_0] : memref<1x2048xf32, #tpu.memory_space<vmem>>, vector<1x2048xf32>
    %c0_1 = arith.constant 0 : index
    %c0_2 = arith.constant 0 : index
    %1 = memref.load %arg1[%c0_1, %c0_2] : memref<1x1xf32, #tpu.memory_space<smem>>
    %2 = vector.broadcast %1 : f32 to vector<1x2048xf32>
    %3 = arith.addf %0, %2 : vector<1x2048xf32>
    %c0_3 = arith.constant 0 : index
    %c0_4 = arith.constant 0 : index
    %4 = vector.load %arg3[%c0_3, %c0_4] : memref<1x2048xf32, #tpu.memory_space<vmem>>, vector<1x2048xf32>
    tpu.vector_store %arg3[%c0_3, %c0_4], %3 {strides = array<i32>} : memref<1x2048xf32, #tpu.memory_space<vmem>>, vector<1x2048xf32>,
    return
  }
  func.func @transform_0(%arg0: i32) -> (i32, i32) {
    %c0_i32 = arith.constant 0 : i32
    %c0_i32_0 = arith.constant 0 : i32
    %c0_i32_1 = arith.constant 0 : i32
    return %c0_i32, %c0_i32_0 : i32, i32
  }
  func.func @transform_1(%arg0: i32) -> (i32, i32) {
    %c0_i32 = arith.constant 0 : i32
    %c0_i32_0 = arith.constant 0 : i32
    return %arg0, %c0_i32 : i32, i32
  }
  func.func @transform_2(%arg0: i32) -> (i32, i32) {
    %c0_i32 = arith.constant 0 : i32
    %c0_i32_0 = arith.constant 0 : i32
    return %arg0, %c0_i32 : i32, i32
  }
}

</mosaic_0001>

<bundles_post_ra>
// kernel: tpu_custom_call.1
= control target key start
LH: loop header
LB: loop body
LE: loop exit
PB: predicated region body
PF: predicated region fallthrough
CT: control target
= control target key end

     0   :  { %8 = vsyncpa [#allocation4], 0  ;;  %s142_s0 = inlined_call_operand.<no memory space> [shape: f32[1,1], index: 0, kind: input, shape index: {}]   ;;  %s143_s1 = inlined_call_operand.hbm [shape: f32[1,2048], index: 1, kind: input, shape index: {}]   ;;  %s144_s2 = inlined_call_operand.hbm [shape: f32[1,2048], index: 2, kind: output, shape index: {}]  }
   0x1   :  { %9 = vsyncpa [#allocation5], 0  ;;  %s98_s9 = smov [#allocation3]   ;;  %s50_s13 = scalar_lea.hbm %s143_s1, 256 }
   0x2   :  { %s18_s10 = sshll.u32 %s98_s9, 4  ;;  %p51_p0 = scmp.ne.s32.totalorder %s143_s1, %s50_s13  ;;  %s19_s10 = int_to_ptr.vmem [resolvable:$true] %s18_s10 }
   0x3   :  { %p54_p1 = scmp.lt.u32.totalorder %s50_s13, %s143_s1 }
   0x5   :  { %p56_p2 = pnand %p54_p1, %p51_p0 }
   0x7   :  { %59 = shalt.err (!%p56_p2)
}
   0x8   :  { %s60_s18 = scalar_lea.vmem %s19_s10, 256  ;;  %p65_p4 = scmp.lt.s32.totalorder %s19_s10, %s19_s10 }
   0x9   :  { %p61_p3 = scmp.ne.s32.totalorder %s19_s10, %s60_s18  ;;  %p66_p5 = scmp.lt.s32.totalorder %s60_s18, %s60_s18 }
   0xb   :  { %p67_p6 = por %p66_p5, %p65_p4 }
   0xd   :  { %p68_p7 = pnand %p67_p6, %p61_p3 }
   0xf   :  { %71 = shalt.err (!%p68_p7)
}
  0x10   :  { %21 = dma.hbm_to_vmem [thread:$0]  %s143_s1, 256, %s19_s10, [#allocation4]  }
  0x11   :  { %94 = dma.done.wait [#allocation4], 256  }
  0x12   :  { %95 = vsyncadd [#allocation4], 4294967040  ;;  %v28_v0 = vstv %s142_s0  ;;  %s99_s23 = smov [#allocation6]   ;;  %v25_v1 = vld [vmem:[#allocation3] sm:$0xff]  ;;  %v26_v2 = vld [vmem:[#allocation3 + $0x8] sm:$0xff] }
  0x13   :  { %s39_s24 = sshll.u32 %s99_s23, 4  ;;  %v29_v3 = vadd.f32 %v28_v0, %v25_v1  ;;  %v30_v4 = vadd.f32 %v28_v0, %v26_v2  ;;  %s40_s24 = int_to_ptr.vmem [resolvable:$true] %s39_s24 }
  0x14   :  { %s72_s25 = scalar_lea.vmem %s40_s24, 256  ;;  %p77_p9 = scmp.lt.s32.totalorder %s40_s24, %s40_s24 }
  0x15   :  { %31 = vst [vmem:[#allocation6] sm:$0xff] %v29_v3  ;;  %32 = vst [vmem:[#allocation6 + $0x8] sm:$0xff] %v30_v4  ;;  %p73_p8 = scmp.ne.s32.totalorder %s40_s24, %s72_s25  ;;  %p78_p10 = scmp.lt.s32.totalorder %s72_s25, %s72_s25 }
  0x17   :  { %p79_p11 = por %p78_p10, %p77_p9 }
  0x19   :  { %p80_p12 = pnand %p79_p11, %p73_p8 }
  0x1b   :  { %83 = shalt.err (!%p80_p12)
}
  0x1c   :  { %s84_s0 = scalar_lea.hbm %s144_s2, 256 }
  0x1d   :  { %p85_p13 = scmp.ne.s32.totalorder %s144_s2, %s84_s0  ;;  %p88_p0 = scmp.lt.u32.totalorder %s84_s0, %s144_s2 }
  0x1f   :  { %p90_p1 = pnand %p88_p0, %p85_p13 }
  0x21   :  { %93 = shalt.err (!%p90_p1)
}
  0x22   :  { %42 = dma.vmem_to_hbm [thread:$0]  %s40_s24, 256, %s144_s2, [#allocation5]  }
  0x23   :  { %96 = dma.done.wait [#allocation5], 256  }
  0x24   :  { %97 = vsyncadd [#allocation5], 4294967040 }
  0x25   :  { %46 = vsyncpa [#allocation4], 1 }
  0x26   :  { %47 = vsyncpa [#allocation5], 1 }

</bundles_post_ra>
